<compile_context>
chip_gen: v6e
topology: v6e:2x2x1
jax: 0.10.0
libtpu: 0.0.40
codegen_flags: <defaults>
</compile_context>

<pallas_src>
import jax
import jax.numpy as jnp
from jax.experimental import pallas as pl
from jax.experimental.pallas import tpu as pltpu  # noqa: F401  (kept for future MLP body)


def _copy_kernel(x_ref, o_ref):
    # Whole-array, lane-dense pass-through (single block, no grid).
    o_ref[...] = x_ref[...]


def pcd_identity(pcd: jax.Array) -> jax.Array:
    """Debug/demo: run the point cloud through a lane-dense Pallas copy.

    The (B, N, C) cloud is viewed as (B, N*C) so the last dim (384 for
    N=128, C=3) is a multiple of 128 lanes, and the entire array is processed
    in one block (grid=()), eliminating per-step overhead and masked stores.
    """
    B, N, C = pcd.shape
    flat = pcd.reshape(B, N * C)  # lane-dense view; 384 = 3 * 128
    out_flat = pl.pallas_call(
        _copy_kernel,
        out_shape=jax.ShapeDtypeStruct((B, N * C), pcd.dtype),
        in_specs=[pl.BlockSpec((B, N * C), lambda: (0, 0))],
        out_specs=pl.BlockSpec((B, N * C), lambda: (0, 0)),
    )(flat)
    return out_flat.reshape(B, N, C)


def pointnet_token_forward(pcd: jax.Array, *, debug_exercise_device: bool = False):
    """Exact semantic equivalent of PointNetToken.forward: returns None.

    Per the performance review, no kernel is launched on the production path
    (the reference is a no-op, so any launch is pure dead work).  Set
    `debug_exercise_device=True` to run the lane-dense identity kernel for
    device-path smoke testing.
    """
    if debug_exercise_device:
        _ = pcd_identity(pcd)
    return None


if __name__ == "__main__":
    key = jax.random.PRNGKey(0)
    # Small point cloud: batch=2, 128 points, 3 coordinate channels.
    pcd = jax.random.normal(key, (2, 128, 3), dtype=jnp.float32)

    # Run the (debug) Pallas kernel once and block on it.
    out = pcd_identity(pcd)
    jax.block_until_ready(out)

    # Kernel correctness check (bit-exact identity pass-through).
    assert out.shape == pcd.shape and out.dtype == pcd.dtype
    assert bool(jnp.all(out == pcd))

    # Exact module semantics: forward returns None (and launches nothing).
    result = pointnet_token_forward(pcd)
    assert result is None

    print("KERNEL_OK")
</pallas_src>

<mosaic_0001>
module attributes {stable_mosaic.version = 11 : i64} {
  func.func @_copy_kernel(%arg0: memref<2x384xf32, #tpu.memory_space<vmem>>, %arg1: memref<2x384xf32, #tpu.memory_space<vmem>>) attributes {dimension_semantics = [], scalar_prefetch = 0 : i64, scratch_operands = 0 : i64, tpu.core_type = #tpu.core_type<tc>} {
    %c0 = arith.constant 0 : index
    %c0_0 = arith.constant 0 : index
    %0 = vector.load %arg0[%c0, %c0_0] : memref<2x384xf32, #tpu.memory_space<vmem>>, vector<2x384xf32>
    %c0_1 = arith.constant 0 : index
    %c0_2 = arith.constant 0 : index
    %1 = vector.load %arg1[%c0_1, %c0_2] : memref<2x384xf32, #tpu.memory_space<vmem>>, vector<2x384xf32>
    tpu.vector_store %arg1[%c0_1, %c0_2], %0 {strides = array<i32>} : memref<2x384xf32, #tpu.memory_space<vmem>>, vector<2x384xf32>,
    return
  }
}

</mosaic_0001>

<bundles_post_ra>
// kernel: tpu_custom_call.1
= control target key start
LH: loop header
LB: loop body
LE: loop exit
PB: predicated region body
PF: predicated region fallthrough
CT: control target
= control target key end

     0   :  { %6 = vsyncpa [#allocation3], 0  ;;  %s102_s0 = inlined_call_operand.hbm [shape: f32[2,384], index: 0, kind: input, shape index: {}]   ;;  %s103_s1 = inlined_call_operand.hbm [shape: f32[2,384], index: 1, kind: output, shape index: {}]  }
   0x1   :  { %7 = vsyncpa [#allocation4], 0  ;;  %s84_s6 = smov [#allocation2]  }
   0x2   :  { %s14_s7 = sshll.u32 %s84_s6, 4  ;;  %s15_s7 = int_to_ptr.vmem [resolvable:$true] %s14_s7 }
   0x3   :  { %s48_s8 = scalar_lea.vmem %s15_s7, 96  ;;  %p53_p1 = scmp.lt.s32.totalorder %s15_s7, %s15_s7 }
   0x4   :  { %p49_p0 = scmp.ne.s32.totalorder %s15_s7, %s48_s8  ;;  %p54_p2 = scmp.lt.s32.totalorder %s48_s8, %s48_s8 }
   0x6   :  { %p55_p3 = por %p54_p2, %p53_p1 }
   0x8   :  { %p56_p4 = pnand %p55_p3, %p49_p0 }
   0xa   :  { %59 = shalt.err (!%p56_p4)
}
   0xb   :  { %17 = dma.hbm_to_vmem [thread:$0]  %s102_s0, 96, %s15_s7, [#allocation3]  }
   0xc   :  { %80 = dma.done.wait [#allocation3], 96  }
   0xd   :  { %81 = vsyncadd [#allocation3], 4294967200  ;;  %s85_s11 = smov [#allocation5]   ;;  %v21_v0 = vld [vmem:[#allocation2] sm:$0x3f] }
   0xe   :  { %s29_s12 = sshll.u32 %s85_s11, 4  ;;  %22 = vst [vmem:[#allocation5] sm:$0x3f] %v21_v0  ;;  %s30_s12 = int_to_ptr.vmem [resolvable:$true] %s29_s12 }
   0xf   :  { %s60_s13 = scalar_lea.vmem %s30_s12, 96  ;;  %p65_p6 = scmp.lt.s32.totalorder %s30_s12, %s30_s12 }
  0x10   :  { %p61_p5 = scmp.ne.s32.totalorder %s30_s12, %s60_s13  ;;  %p66_p7 = scmp.lt.s32.totalorder %s60_s13, %s60_s13 }
  0x12   :  { %p67_p8 = por %p66_p7, %p65_p6 }
  0x14   :  { %p68_p9 = pnand %p67_p8, %p61_p5 }
  0x16   :  { %71 = shalt.err (!%p68_p9)
}
  0x17   :  { %32 = dma.vmem_to_hbm [thread:$0]  %s30_s12, 96, %s103_s1, [#allocation4]  }
  0x18   :  { %82 = dma.done.wait [#allocation4], 96  }
  0x19   :  { %83 = vsyncadd [#allocation4], 4294967200 }
  0x1a   :  { %36 = vsyncpa [#allocation3], 1 }
  0x1b   :  { %37 = vsyncpa [#allocation4], 1 }

</bundles_post_ra>
